<compile_context>
chip_gen: v5e
topology: v5e:2x2
jax: 0.10.0
libtpu: 0.0.40
codegen_flags: <defaults>
</compile_context>

<pallas_src>
import functools
import math

import jax
import jax.numpy as jnp
import numpy as np
from jax.experimental import pallas as pl
from jax.experimental.pallas import tpu as pltpu


def attention_head_kernel(x_ref, wqkv_ref, bqkv_ref, o_ref, *, head_size, seg):
    # bf16 operands for the MXU; accumulate in f32.
    x = x_ref[0].astype(jnp.bfloat16)                       # (N, D)
    w = wqkv_ref[...]                                        # (D, 3*seg) bf16

    # Fused Q/K/V projection: one lane-dense matmul; bias add in f32.
    qkv = jax.lax.dot_general(
        x, w, (((1,), (0,)), ((), ())),
        preferred_element_type=jnp.float32) + bqkv_ref[...]  # (N, 3*seg) f32

    # Lane-tile-aligned segment slices (seg is a multiple of 128).
    q = qkv[:, 0:seg]                # 1/sqrt(head_size) already folded into Wq/bq
    k = qkv[:, seg:2 * seg]
    v = qkv[:, 2 * seg:3 * seg]

    # Scores: contract over the (zero-padded) head dim; bf16 in, f32 out.
    s = jax.lax.dot_general(
        q.astype(jnp.bfloat16), k.astype(jnp.bfloat16),
        (((1,), (1,)), ((), ())),
        preferred_element_type=jnp.float32)                  # (N, N)

    # Numerically-stable f32 softmax; reciprocal lands on the EUP slot.
    s = s - jnp.max(s, axis=-1, keepdims=True)
    p = jnp.exp(s)
    p = p * pl.reciprocal(jnp.sum(p, axis=-1, keepdims=True), approx=True)

    out = jax.lax.dot_general(
        p.astype(jnp.bfloat16), v.astype(jnp.bfloat16),
        (((1,), (0,)), ((), ())),
        preferred_element_type=jnp.float32)                  # (N, seg)

    o_ref[0] = out[:, :head_size].astype(o_ref.dtype)


def prepare_attention_params(wq, bq, wk, bk, wv, bv, weight_dtype=jnp.bfloat16):
    """One-time parameter preparation (hoisted out of the forward path).

    wq/wk/wv: (head_size, D) PyTorch nn.Linear layout; bq/bk/bv: (head_size,).
    Returns (wqkv, bqkv, head_size, seg):
      wqkv: (D, 3*seg) fused [Wq*scale | Wk | Wv] in (in, out) layout, each
            segment zero-padded to a 128-lane multiple, stored in weight_dtype.
      bqkv: (1, 3*seg) fused bias (Q part pre-scaled), f32.
    """
    hs, D = wq.shape
    seg = ((hs + 127) // 128) * 128           # lane-aligned segment width
    scale = 1.0 / math.sqrt(hs)

    def seg_w(w):                             # (hs, D) -> (D, seg)
        return jnp.pad(w.T, ((0, 0), (0, seg - hs)))

    def seg_b(b):                             # (hs,) -> (seg,)
        return jnp.pad(b, (0, seg - hs))

    wqkv = jnp.concatenate([seg_w(wq * scale), seg_w(wk), seg_w(wv)], axis=1)
    bqkv = jnp.concatenate([seg_b(bq * scale), seg_b(bk), seg_b(bv)])[None, :]
    return wqkv.astype(weight_dtype), bqkv.astype(jnp.float32), hs, seg


def attention_head(x, wqkv, bqkv, head_size, seg):
    """x: (B, N, D); wqkv/bqkv: outputs of prepare_attention_params()."""
    B, N, D = x.shape
    kernel = functools.partial(attention_head_kernel,
                               head_size=head_size, seg=seg)

    grid_spec = pltpu.PrefetchScalarGridSpec(
        num_scalar_prefetch=0,
        grid=(B,),
        in_specs=[
            pl.BlockSpec((1, N, D), lambda b: (b, 0, 0)),       # x (per batch)
            pl.BlockSpec((D, 3 * seg), lambda b: (0, 0)),       # fused Wqkv (resident)
            pl.BlockSpec((1, 3 * seg), lambda b: (0, 0)),       # fused bias (resident)
        ],
        out_specs=pl.BlockSpec((1, N, head_size), lambda b: (b, 0, 0)),
    )

    return pl.pallas_call(
        kernel,
        out_shape=jax.ShapeDtypeStruct((B, N, head_size), x.dtype),
        grid_spec=grid_spec,
        compiler_params=pltpu.CompilerParams(
            dimension_semantics=("parallel",)),
    )(x, wqkv, bqkv)


def reference_forward(x, wq, bq, wk, bk, wv, bv):
    """Pure-JAX (f32) reference matching the PyTorch AttentionHead.forward."""
    hs = wq.shape[0]
    q = x @ wq.T + bq
    k = x @ wk.T + bk
    v = x @ wv.T + bv
    s = jnp.einsum("bnd,bmd->bnm", q, k) / math.sqrt(hs)
    p = jax.nn.softmax(s, axis=-1)
    return jnp.einsum("bnm,bmd->bnd", p, v)


if __name__ == "__main__":
    B, N, D, hs = 2, 8, 32, 8      # batch, seq_len, hidden, attention_head_size

    key = jax.random.PRNGKey(0)
    ks = jax.random.split(key, 8)
    f32 = jnp.float32

    x = jax.random.normal(ks[0], (B, N, D), f32)

    # nn.Linear layout: weight (out, in), bias (out,)
    wq = 0.1 * jax.random.normal(ks[1], (hs, D), f32)
    bq = 0.1 * jax.random.normal(ks[2], (hs,), f32)
    wk = 0.1 * jax.random.normal(ks[3], (hs, D), f32)
    bk = 0.1 * jax.random.normal(ks[4], (hs,), f32)
    wv = 0.1 * jax.random.normal(ks[5], (hs, D), f32)
    bv = 0.1 * jax.random.normal(ks[6], (hs,), f32)

    # One-time parameter prep (not part of the per-forward cost).
    wqkv, bqkv, head_size, seg = prepare_attention_params(wq, bq, wk, bk, wv, bv)

    out = attention_head(x, wqkv, bqkv, head_size, seg)
    out = jax.block_until_ready(out)

    ref = reference_forward(x, wq, bq, wk, bk, wv, bv)
    # Tolerance accounts for bf16 MXU operands (with f32 accumulation) and the
    # EUP approximate reciprocal in the softmax denominator.
    np.testing.assert_allclose(np.asarray(out), np.asarray(ref),
                               atol=2e-2, rtol=2e-2)

    print("KERNEL_OK")
</pallas_src>

<mosaic_0001>
module attributes {stable_mosaic.version = 11 : i64} {
  func.func @attention_head_kernel(%arg0: i32, %arg1: memref<1x8x32xf32, #tpu.memory_space<vmem>>, %arg2: memref<32x384xbf16, #tpu.memory_space<vmem>>, %arg3: memref<1x384xf32, #tpu.memory_space<vmem>>, %arg4: memref<1x8x8xf32, #tpu.memory_space<vmem>>) attributes {dimension_semantics = [#tpu.dimension_semantics<parallel>], iteration_bounds = array<i64: 2>, scalar_prefetch = 0 : i64, scratch_operands = 0 : i64, tpu.core_type = #tpu.core_type<tc>, window_params = [{transform_indices = @transform_0, window_bounds = array<i64: 1, 8, 32>}, {pipeline_mode = #tpu.pipeline_mode<synchronous>, transform_indices = @transform_1, window_bounds = array<i64: 32, 384>}, {pipeline_mode = #tpu.pipeline_mode<synchronous>, transform_indices = @transform_2, window_bounds = array<i64: 1, 384>}, {transform_indices = @transform_3, window_bounds = array<i64: 1, 8, 8>}]} {
    %c0 = arith.constant 0 : index
    %c0_0 = arith.constant 0 : index
    %c0_1 = arith.constant 0 : index
    %0 = vector.load %arg1[%c0, %c0_0, %c0_1] : memref<1x8x32xf32, #tpu.memory_space<vmem>>, vector<1x8x32xf32>
    %1 = vector.shape_cast %0 : vector<1x8x32xf32> to vector<8x32xf32>
    %2 = arith.truncf %1 : vector<8x32xf32> to vector<8x32xbf16>
    %c0_2 = arith.constant 0 : index
    %c0_3 = arith.constant 0 : index
    %3 = vector.load %arg2[%c0_2, %c0_3] : memref<32x384xbf16, #tpu.memory_space<vmem>>, vector<32x384xbf16>
    %cst = arith.constant dense<0.000000e+00> : vector<8x384xf32>
    %4 = tpu.matmul %2, %3, %cst {dimension_numbers = #tpu.dot_dimension_numbers<[1], [0], [0], [1], [0, 0, 1, 1], [], []>} : vector<8x32xbf16>, vector<32x384xbf16>, vector<8x384xf32> -> vector<8x384xf32>
    %c0_4 = arith.constant 0 : index
    %c0_5 = arith.constant 0 : index
    %5 = vector.load %arg3[%c0_4, %c0_5] : memref<1x384xf32, #tpu.memory_space<vmem>>, vector<1x384xf32>
    %6 = vector.broadcast %5 : vector<1x384xf32> to vector<8x384xf32>
    %7 = arith.addf %4, %6 : vector<8x384xf32>
    %8 = vector.extract_strided_slice %7 {offsets = [0, 0], sizes = [8, 128], strides = [1, 1]} : vector<8x384xf32> to vector<8x128xf32>
    %9 = vector.extract_strided_slice %7 {offsets = [0, 128], sizes = [8, 128], strides = [1, 1]} : vector<8x384xf32> to vector<8x128xf32>
    %10 = vector.extract_strided_slice %7 {offsets = [0, 256], sizes = [8, 128], strides = [1, 1]} : vector<8x384xf32> to vector<8x128xf32>
    %11 = arith.truncf %8 : vector<8x128xf32> to vector<8x128xbf16>
    %12 = arith.truncf %9 : vector<8x128xf32> to vector<8x128xbf16>
    %cst_6 = arith.constant dense<0.000000e+00> : vector<8x8xf32>
    %13 = tpu.matmul %11, %12, %cst_6 {dimension_numbers = #tpu.dot_dimension_numbers<[1], [1], [0], [0], [0, 0, 1, 0], [], []>} : vector<8x128xbf16>, vector<8x128xbf16>, vector<8x8xf32> -> vector<8x8xf32>
    %cst_7 = arith.constant dense<0xFF800000> : vector<8xf32>
    %14 = vector.multi_reduction <maximumf>, %13, %cst_7 [1] : vector<8x8xf32> to vector<8xf32>
    %15 = vector.shape_cast %14 : vector<8xf32> to vector<8x1xf32>
    %16 = vector.broadcast %15 : vector<8x1xf32> to vector<8x8xf32>
    %17 = arith.subf %13, %16 : vector<8x8xf32>
    %18 = math.exp %17 : vector<8x8xf32>
    %cst_8 = arith.constant dense<0.000000e+00> : vector<8xf32>
    %19 = vector.multi_reduction <add>, %18, %cst_8 [1] : vector<8x8xf32> to vector<8xf32>
    %20 = vector.shape_cast %19 : vector<8xf32> to vector<8x1xf32>
    %21 = tpu.reciprocal %20 {approx = true} : vector<8x1xf32> -> vector<8x1xf32>
    %22 = vector.broadcast %21 : vector<8x1xf32> to vector<8x8xf32>
    %23 = arith.mulf %18, %22 : vector<8x8xf32>
    %24 = arith.truncf %23 : vector<8x8xf32> to vector<8x8xbf16>
    %25 = arith.truncf %10 : vector<8x128xf32> to vector<8x128xbf16>
    %cst_9 = arith.constant dense<0.000000e+00> : vector<8x128xf32>
    %26 = tpu.matmul %24, %25, %cst_9 {dimension_numbers = #tpu.dot_dimension_numbers<[1], [0], [0], [1], [0, 0, 1, 1], [], []>} : vector<8x8xbf16>, vector<8x128xbf16>, vector<8x128xf32> -> vector<8x128xf32>
    %27 = vector.extract_strided_slice %26 {offsets = [0, 0], sizes = [8, 8], strides = [1, 1]} : vector<8x128xf32> to vector<8x8xf32>
    %c0_10 = arith.constant 0 : index
    %c0_11 = arith.constant 0 : index
    %c0_12 = arith.constant 0 : index
    %28 = vector.load %arg4[%c0_10, %c0_11, %c0_12] : memref<1x8x8xf32, #tpu.memory_space<vmem>>, vector<1x8x8xf32>
    %29 = vector.shape_cast %28 : vector<1x8x8xf32> to vector<8x8xf32>
    %30 = vector.shape_cast %27 : vector<8x8xf32> to vector<1x8x8xf32>
    tpu.vector_store %arg4[%c0_10, %c0_11, %c0_12], %30 {strides = array<i32>} : memref<1x8x8xf32, #tpu.memory_space<vmem>>, vector<1x8x8xf32>,
    return
  }
  func.func @transform_0(%arg0: i32) -> (i32, i32, i32) {
    %c0_i32 = arith.constant 0 : i32
    %c0_i32_0 = arith.constant 0 : i32
    %c0_i32_1 = arith.constant 0 : i32
    return %arg0, %c0_i32, %c0_i32_0 : i32, i32, i32
  }
  func.func @transform_1(%arg0: i32) -> (i32, i32) {
    %c0_i32 = arith.constant 0 : i32
    %c0_i32_0 = arith.constant 0 : i32
    %c0_i32_1 = arith.constant 0 : i32
    return %c0_i32, %c0_i32_0 : i32, i32
  }
  func.func @transform_2(%arg0: i32) -> (i32, i32) {
    %c0_i32 = arith.constant 0 : i32
    %c0_i32_0 = arith.constant 0 : i32
    %c0_i32_1 = arith.constant 0 : i32
    return %c0_i32, %c0_i32_0 : i32, i32
  }
  func.func @transform_3(%arg0: i32) -> (i32, i32, i32) {
    %c0_i32 = arith.constant 0 : i32
    %c0_i32_0 = arith.constant 0 : i32
    %c0_i32_1 = arith.constant 0 : i32
    return %arg0, %c0_i32, %c0_i32_0 : i32, i32, i32
  }
}

</mosaic_0001>

<bundles_post_ra>
// kernel: tpu_custom_call.1
= control target key start
LH: loop header
LB: loop body
LE: loop exit
PB: predicated region body
PF: predicated region fallthrough
CT: control target
= control target key end

     0   :  { %8 = vsyncpa [#allocation3], 0  ;;  %s933_s0 = inlined_call_operand.hbm [shape: f32[2,8,32], index: 0, kind: input, shape index: {}]   ;;  %s934_s1 = inlined_call_operand.hbm [shape: bf16[32,384], index: 1, kind: input, shape index: {}]   ;;  %s935_s2 = inlined_call_operand.hbm [shape: f32[1,384], index: 2, kind: input, shape index: {}]   ;;  %s936_s3 = inlined_call_operand.hbm [shape: f32[2,8,8], index: 3, kind: output, shape index: {}]  }
   0x1   :  { %10 = vsyncpa [#allocation3 + $0x1], 0 }
   0x2   :  { %11 = vsyncpa [#allocation6], 0 }
   0x3   :  { %12 = vsyncpa [#allocation4], 0 }
   0x4   :  { %14 = vsyncpa [#allocation4 + $0x1], 0  ;;  %s777_s12 = smov 0   ;;  %s779_s13 = smov 0  }
   0x5   :  { %s781_s14 = smov 0   ;;  %s783_s15 = smov 0  }
   0x6 LB: > { %s130_s18 = sshll.u32 %s934_s1, 4  ;;  %s801_s19 = sadd.s32 4294967295, %s751_s15   ;;  %s751_s15 = sphi %s783_s15, %s947_s15   ;;  %s747_s14 = sphi %s781_s14, %s946_s14   ;;  %s743_s13 = sphi %s779_s13, %s945_s13   ;;  %s739_s12 = sphi %s777_s12, %s944_s12   ;;  %s131_s18 = int_to_ptr.hbm [resolvable:$true] %s130_s18 }
   0x7   : > { %p469_p0 = scmp.ge.s32.totalorder %s751_s15, 1  ;;  %p41_p1 = scmp.eq.s32.totalorder %s801_s19, 0 }
   0x8   : > { %p119_p2 = scmp.lt.s32.totalorder %s751_s15, 3  ;;  %s753_s21 = smov [#allocation5]  }
   0x9   : > { %s132_s22 = sshll.u32 %s753_s21, 4  ;;  %s145_s25 = sshll.u32 %s935_s2, 4  ;;  %s133_s22 = int_to_ptr.vmem [resolvable:$true] %s132_s22  ;;  %s146_s25 = int_to_ptr.hbm [resolvable:$true] %s145_s25 }
   0xa   : > { %p806_p3 = pnand %p469_p0, %p119_p2  ;;  %s754_s26 = smov [#allocation7]  }
   0xb   : > { %s147_s27 = sshll.u32 %s754_s26, 4  ;;  %s755_s28 = smov 192   ;;  %s148_s27 = int_to_ptr.vmem [resolvable:$true] %s147_s27 }
   0xc   : > { %p530_p4 = pneg %p806_p3  ;;  %s756_s29 = smov 12  }
   0xd   : > { %s468_s30 = sadd.s32 4294967294, %s751_s15   ;;  %s820_s4 = sadd.s32 1, %s751_s15  }
   0xe   : > { %p531_p6 = pnand %p530_p4, %p41_p1  ;;  %s24_s5 = ssub.s32 %s751_s15, %s820_s4 }
   0xf   : > { %s27_s6 = sadd.s32 1, %s747_s14  ;;  %p25_p7 = scmp.eq.s32.totalorder %s24_s5, 0 }
  0x10   : > { %533 = dma.hbm_to_vmem [thread:$0]  (!%p531_p6), %s131_s18, 768, %s133_s22, [#allocation6], %s755_s28, %s755_s28, %s756_s29  }
  0x11   : > { %536 = dma.hbm_to_vmem [thread:$0]  (!%p531_p6), %s146_s25, 48, %s148_s27, [#allocation6]  }
  0x12   : > { %p34_p8 = scmp.ne.s32.totalorder %s747_s14, %s743_s13  ;;  %p35_p9 = scmp.eq.s32.totalorder %s751_s15, 0 }
  0x13   : > { %p40_p10 = scmp.ne.s32.totalorder %s743_s13, %s739_s12  ;;  %p106_p13 = scmp.eq.s32.totalorder %s801_s19, 1 }
  0x14   : > { %s831_s7 = scalar_select %p25_p7, %s747_s14, %s27_s6  }
  0x15   : > { %p833_p11 = por %p35_p9, %p34_p8  ;;  %p839_p12 = por %p41_p1, %p40_p10 }
  0x16   : > { %p112_p0 = scmp.eq.s32.totalorder %s468_s30, 1  ;;  %p547_p2 = scmp.lt.s32.totalorder %s751_s15, 2 }
  0x17   : > { %s158_s10 = sand.u32 1, %s747_s14   ;;  %p846_p4 = por %p106_p13, %p34_p8 }
  0x18   : > { %p850_p6 = por %p112_p0, %p40_p10  ;;  %s473_s17 = sshll.u32 %s158_s10, 3 }
  0x19   : > { %s474_s18 = sshll.u32 %s751_s15, 3  ;;  %s162_s24 = scalar_lea.vmem [#allocation2], %s473_s17 }
  0x1a   : > { %s166_s23 = scalar_lea.hbm %s933_s0, %s474_s18  ;;  %s170_s25 = sshll.u32 %s162_s24, 4  ;;  %s171_s25 = int_to_ptr.vmem [resolvable:$true] %s170_s25 }
  0x1b   : > { %s168_s26 = sshll.u32 %s166_s23, 4  ;;  %p860_p7 = pnand %p547_p2, %p833_p11  ;;  %s169_s26 = int_to_ptr.hbm [resolvable:$true] %s168_s26 }
  0x1c   : > { %s159_s28 = scalar_lea.sflag [#allocation3], %s158_s10  ;;  %s651_s29 = sshra.s32 %s169_s26, 4  ;;  %s652_s29 = int_to_ptr.hbm [resolvable:$true] %s651_s29 }
  0x1d   : > { %s653_s30 = scalar_lea.hbm %s652_s29, 8  ;;  %p655_p9 = pneg %p860_p7 }
  0x1e   : > { %p654_p8 = scmp.ne.s32.totalorder %s652_s29, %s653_s30  ;;  %s658_s17 = scalar_lea.hbm %s933_s0, 16 }
  0x1f   : > { %p659_p11 = scmp.lt.s32.totalorder %s652_s29, %s933_s0  ;;  %p660_p0 = scmp.lt.s32.totalorder %s658_s17, %s653_s30 }
  0x20   : > { %p656_p10 = pnand %p655_p9, %p654_p8 }
  0x21   : > { %p661_p2 = por %p660_p0, %p659_p11 }
  0x22   : > { %p657_p13 = pneg %p656_p10 }
  0x24   : > { %p662_p5 = pnand %p661_p2, %p657_p13 }
  0x26   : > { %665 = shalt.err (!%p662_p5)
}
  0x27   : > { %540 = dma.hbm_to_vmem [thread:$0]  (!%p860_p7), %s169_s26, 128, %s171_s25, %s159_s28  }
  0x28   : > { %179 = sbr.rel (%p806_p3) target bundleno = 718 (0x2ce), region = 32  ;;  %s877_s10 = sand.u32 (!%p806_p3), 1, %s743_s13  }
  0x29   : > { %s476_s21 = sshll.u32 (!%p806_p3), %s877_s10, 3  ;;  %s182_s22 = scalar_lea.sflag (!%p806_p3), [#allocation3], %s877_s10 }
  0x2a   : > { %s185_s23 = scalar_lea.vmem (!%p806_p3), [#allocation2], %s476_s21 }
  0x2d   : > { %726 = dma.done.wait (%p839_p12), %s182_s22, 128  }
  0x2e   : > { %728 = vsyncadd (%p839_p12), %s182_s22, 4294967168 }
  0x2f   : > { %730 = dma.done.wait (%p41_p1), [#allocation6], 816  }
  0x30   : > { %732 = vsyncadd (%p41_p1), [#allocation6], 4294966480  ;;  %v494_v0 = vld [vmem:[#allocation5 + $0x18] sm:$0xf]  ;;  %v516_v1 = vld [vmem:[#allocation5 + $0x20] sm:$0xf0] }
  0x31   : > { %v515_v2 = vld [vmem:[#allocation5 + $0x1c] sm:$0xf]  ;;  %v495_v3 = vor.u32 %v516_v1, %v494_v0  ;;  %v496_v4 = vld [vmem:[#allocation5 + $0x24] sm:$0xf0]  ;;  %v482_v5 = vld [vmem:[#allocation5] sm:$0xf] }
  0x32   : > { %v513_v6 = vld [vmem:[#allocation5 + $0x8] sm:$0xf0]  ;;  %v499_v7 = vor.u32 %v515_v2, %v496_v4  ;;  %v512_v8 = vld [vmem:[#allocation5 + $0x4] sm:$0xf]  ;;  %v484_v9 = vld [vmem:[#allocation5 + $0xc] sm:$0xf0] }
  0x33   : > { %280 = vmatpush.bf16.msra.mxu0 %v495_v3  ;;  %v483_v10 = vor.u32 %v513_v6, %v482_v5  ;;  %v220_v11 = vld [vmem:[%s185_s23] sm:$0xff]  ;;  %v487_v12 = vor.u32 %v512_v8, %v484_v9  ;;  %vm270_vm0 = vcmask 261120   ;;  %v502_v25 = vld [vmem:[#allocation5 + $0x20] sm:$0xf]  ;;  %v517_v26 = vld [vmem:[#allocation5 + $0x28] sm:$0xf0] }
  0x34   : > { %293 = vmatpush.bf16.msra.mxu1 %v499_v7  ;;  %v221_v13 = vpack.c.bf16 %v220_v11, %v220_v11  ;;  %v230_v14 = vld [vmem:[#allocation7] sm:$0x7]  ;;  %v490_v27 = vld [vmem:[#allocation5 + $0x8] sm:$0xf]  ;;  %v503_v28 = vor.u32 %v517_v26, %v502_v25  ;;  %v514_v29 = vld [vmem:[#allocation5 + $0x10] sm:$0xf0] }
  0x35   : > { %v233_v15 = vperm.slane %v230_v14, 1  ;;  %v232_v17 = vperm.slane %v230_v14, 0  ;;  %v491_v30 = vor.u32 %v514_v29, %v490_v27  ;;  %vm328_vm1 = vcmask 64512   ;;  %s509_s20 = sshll.u32 %s801_s19, 3  ;;  %s218_s26 = scalar_lea.vmem [#allocation8], %s476_s21 }
  0x36   : > { %306 = vmatpush.bf16.msra.mxu2 %v503_v28  ;;  %v234_v34 = vperm.slane %v230_v14, 2  ;;  %vm345_vm2 = vcmask 1043456   ;;  %s374_s25 = scalar_lea.hbm %s936_s3, %s509_s20  ;;  %s376_s27 = sshll.u32 %s218_s26, 4  ;;  %s377_s27 = int_to_ptr.vmem [resolvable:$true] %s376_s27 }
  0x37   : > { %281 = vmatpush.bf16.msra.mxu0 %v483_v10  ;;  %s378_s28 = sshll.u32 %s374_s25, 4  ;;  %s364_s29 = scalar_lea.sflag [#allocation4], %s877_s10  ;;  %s379_s28 = int_to_ptr.hbm [resolvable:$true] %s378_s28 }
  0x38   : > { %294 = vmatpush.bf16.msra.mxu1 %v487_v12  ;;  %s695_s30 = sshra.s32 %s379_s28, 4  ;;  %s701_s17 = scalar_lea.hbm %s936_s3, 16  ;;  %s696_s30 = int_to_ptr.hbm [resolvable:$true] %s695_s30 }
  0x39   : > { %s697_s5 = scalar_lea.hbm %s696_s30, 8  ;;  %p702_p12 = scmp.lt.s32.totalorder %s696_s30, %s936_s3 }
  0x3a   : > { %504 = vmatmul.msk.bf16.vlgmr.msra.gmra.mxu0 %vm270_vm0, %v221_v13  ;;  %307 = vmatpush.bf16.msra.mxu2 %v491_v30  ;;  %p698_p1 = scmp.ne.s32.totalorder %s696_s30, %s697_s5  ;;  %p703_p7 = scmp.lt.s32.totalorder %s701_s17, %s697_s5 }
  0x3b   : > { %505 = vmatmul.msk.bf16.vlgmr.msra.gmra.mxu1 %vm270_vm0, %v221_v13 }
  0x3c   : > { %p699_p3 = pnand %p698_p1, %p846_p4  ;;  %p704_p8 = por %p703_p7, %p702_p12 }
  0x3d   : > { %506 = vmatmul.msk.bf16.vlgmr.msra.gmra.mxu2 %vm270_vm0, %v221_v13 }
  0x3e   : > { %p700_p5 = pneg %p699_p3 }
  0x40   : > { %p705_p9 = pnand %p704_p8, %p700_p5 }
  0xb7   : > { %v283_v16 = vpop.f32.mrf.mxu0 }
  0xb8   : > { %v296_v18 = vpop.f32.mrf.mxu1  ;;  %v284_v21 = vadd.f32 %v283_v16, %v232_v17 }
  0xb9   : > { %v297_v19 = vadd.f32 %v296_v18, %v233_v15 }
  0xba   : > { %v313_v23 = vpack.c.bf16 %v284_v21, %v284_v21 }
  0xbb   : > { %v314_v20 = vpack.c.bf16 %v297_v19, %v297_v19 }
  0xbd   : > { %322 = vmatpush.bf16.xpose.msra.mxu3 %v314_v20 }
  0xbf   : > { %v285_v22 = vpop.f32.mrf.mxu0 }
  0xc0   : > { %v298_v24 = vpop.f32.mrf.mxu1  ;;  %v309_v36 = vpop.f32.mrf.mxu2 }
  0xc1   : > { %v310_v38 = vadd.f32 %v309_v36, %v234_v34 }
  0xc3   : > { %v341_v40 = vpack.c.bf16 %v310_v38, %v310_v38 }
  0xc4   : > { %323 = vmatmul.bf16.vlgmr.msra.gmra.mxu3 %v313_v23 }
  0xc5   : > { %v347_v41 = vsel %vm345_vm2, %v341_v40, 0 }
  0xc6   : > { %356 = vmatpush.bf16.msrb.mxu0 %v347_v41 }
  0xc8   : > { %v311_v42 = vpop.f32.mrf.mxu2 }
 0x147   : > { %v324_v31 = vpop.f32.mrf.mxu3 }
 0x148   : > { %v329_v32 = vsel %vm328_vm1, %v324_v31, -inf }
 0x149   : > { %330 = vmax.xlane.f32.xlu0 %v329_v32 }
 0x14f   : > { %v326_v33 = vpop.f32.mrf.mxu3 }
 0x1bc   : > { %v331_v35 = vpop.xlane.xlu0 %330 }
 0x1bd   : > { %v332_v37 = vsub.f32 %v324_v31, %v331_v35 }
 0x1bf   : > { %v333_v39 = vmul.f32 1.442695, %v332_v37 }
 0x1c1   : > { %587 = vpow2.f32 %v333_v39 }
 0x1c7   : > { %v588_v43 = vpop.eup %587 }
 0x1c8   : > { %v335_v44 = vsel %vm328_vm1, %v588_v43, 0.0 }
 0x1c9   : > { %336 = vadd.xlane.f32.xlu0 %v335_v44 }
 0x23c   : > { %v337_v45 = vpop.xlane.xlu0 %336 }
 0x23d   : > { %589 = vrcp.f32 %v337_v45 }
 0x243   : > { %v590_v46 = vpop.eup %589 }
 0x244   : > { %v339_v47 = vmul.f32 %v590_v46, %v588_v43 }
 0x246   : > { %v340_v48 = vpack.c.bf16 %v339_v47, %v339_v47 }
 0x248   : > { %507 = vmatmul.msk.bf16.vlgmr.msrb.gmra.mxu0 %vm328_vm1, %v340_v48 }
 0x2c5   : > { %v358_v49 = vpop.f32.mrf.mxu0 }
 0x2c6   : > { %362 = vst.msk [vmem:[%s218_s26] sm:$0xff] %vm328_vm1, %v358_v49 }
 0x2c7   : > { %708 = shalt.err (!%p705_p9)
}
 0x2c8   : > { %528 = dma.vmem_to_hbm [thread:$0]  (%p846_p4), %s377_s27, 128, %s379_s28, %s364_s29  }
 0x2cd   : > { %v360_v50 = vpop.f32.mrf.mxu0 }
 0x2ce PF: > { %s390_s10 = sand.u32 1, %s739_s12   ;;  %p943_p10 = scmp.ge.s32.totalorder %s751_s15, 2 }
 0x2cf   : > { %s391_s21 = scalar_lea.sflag [#allocation4], %s390_s10 }
 0x2d0   : > { %p542_p13 = pnand %p943_p10, %p850_p6 }
 0x2d2   : > { %p543_p11 = pneg %p542_p13 }
 0x2d4   : > { %734 = dma.done.wait (%p543_p11), %s391_s21, 128  }
 0x2d5   : > { %736 = vsyncadd (%p543_p11), %s391_s21, 4294967168  ;;  %p17_p0 = scmp.ge.s32.totalorder %s820_s4, 4   ;;  %s944_s12 = smov %s743_s13 }
 0x2d6   : > { %s945_s13 = smov %s747_s14  ;;  %s946_s14 = smov %s831_s7 }
 0x2d7   : > { %s947_s15 = smov %s820_s4  ;;  %19 = sbr.rel (!%p17_p0) target bundleno = 6 (0x6), region = 85 }
 0x2dc   :  { %397 = vsyncpa [#allocation3], 1 }
 0x2dd   :  { %399 = vsyncpa [#allocation3 + $0x1], 1 }
 0x2de   :  { %400 = vsyncpa [#allocation6], 1 }
 0x2df   :  { %401 = vsyncpa [#allocation4], 1 }
 0x2e0   :  { %403 = vsyncpa [#allocation4 + $0x1], 1 }

</bundles_post_ra>
